<compile_context>
chip_gen: v7x
topology: tpu7x:2x2x1
jax: 0.10.0
libtpu: 0.0.40
codegen_flags: <defaults>
</compile_context>

<pallas_src>
import functools
import math

import jax
import jax.numpy as jnp
from jax.experimental import pallas as pl
from jax.experimental.pallas import tpu as pltpu

LOG_SIG_MAX = 2.0
LOG_SIG_MIN = -20.0


def _round_up(x, m):
    return ((x + m - 1) // m) * m


# ----------------------------------------------------------------------------
# Kernel
# ----------------------------------------------------------------------------
def _actor_kernel(x_ref, w1_ref, b1_ref, w2_ref, b2_ref, wh_ref, bh_ref,
                  mu_ref, ls_ref, *, action_dim, matmul_dtype):
    # x / weights arrive already in matmul_dtype; only h1/h2 need casting on
    # the bf16 path (accumulation is always f32 via preferred_element_type).
    cast = lambda a: a if a.dtype == matmul_dtype else a.astype(matmul_dtype)

    # fc1 + relu  (input normalization already folded into w1/b1 by prepare)
    h1 = jnp.dot(cast(x_ref[...]), cast(w1_ref[...]),
                 preferred_element_type=jnp.float32)
    h1 = jnp.maximum(h1 + b1_ref[...], 0.0)                     # (TB, Hp) f32

    # fc2 + relu
    h2 = jnp.dot(cast(h1), cast(w2_ref[...]),
                 preferred_element_type=jnp.float32)
    h2 = jnp.maximum(h2 + b2_ref[...], 0.0)                     # (TB, Hp) f32

    # fused mu|log_std head: one (Hp, 2A) dot, split in-kernel.
    head = jnp.dot(cast(h2), cast(wh_ref[...]),
                   preferred_element_type=jnp.float32)
    head = head + bh_ref[...]                                   # (TB, 2A) f32

    A = action_dim
    mu_ref[...] = head[:, :A].astype(mu_ref.dtype)
    ls_ref[...] = jnp.clip(head[:, A:2 * A],
                           LOG_SIG_MIN, LOG_SIG_MAX).astype(ls_ref.dtype)


# ----------------------------------------------------------------------------
# One-time parameter preparation (hoisted out of the per-call path)
# ----------------------------------------------------------------------------
def prepare_actor_params(params, xmean, xstd, *, matmul_dtype=jnp.float32):
    """Fold normalization into fc1, fuse the two heads, pad hidden dim to 128.

    Run once per parameter update.  Use matmul_dtype=jnp.bfloat16 on v6e/v7x
    for the fast MXU path; keep the default float32 on v5e (no bf16 VALU).
    """
    S, H = params["w1"].shape
    A = params["wmu"].shape[1]
    Hp = _round_up(H, 128)

    # Fold (x - mean)/std into fc1:  W1' = w1 * (1/std)[:,None],
    # b1' = b1 - (mean/std) @ w1.
    # TODO(synk): no eps on xstd, matching the PyTorch reference divide.
    inv_std = 1.0 / xstd
    w1 = params["w1"] * inv_std[:, None]
    b1 = params["b1"] - (xmean * inv_std) @ params["w1"]

    w2 = params["w2"]
    b2 = params["b2"]
    wh = jnp.concatenate([params["wmu"], params["wls"]], axis=1)      # (H, 2A)
    bh = jnp.concatenate([params["bmu"], params["bls"]], axis=0)      # (2A,)

    # Zero-pad the hidden dim so h1/h2 are lane-dense (exact: padded columns
    # stay 0 through bias-add + ReLU and contribute 0 downstream).
    if Hp != H:
        w1 = jnp.pad(w1, ((0, 0), (0, Hp - H)))
        b1 = jnp.pad(b1, (0, Hp - H))
        w2 = jnp.pad(w2, ((0, Hp - H), (0, Hp - H)))
        b2 = jnp.pad(b2, (0, Hp - H))
        wh = jnp.pad(wh, ((0, Hp - H), (0, 0)))

    if matmul_dtype != jnp.float32:        # halve weight DMA bytes on bf16 path
        w1 = w1.astype(matmul_dtype)
        w2 = w2.astype(matmul_dtype)
        wh = wh.astype(matmul_dtype)

    return {
        "w1": w1, "b1": b1.reshape(1, Hp),
        "w2": w2, "b2": b2.reshape(1, Hp),
        "wh": wh, "bh": bh.reshape(1, 2 * A),
    }


# ----------------------------------------------------------------------------
# Forward
# ----------------------------------------------------------------------------
def actor_forward(x, prepped, *, block_b=None):
    """Actor forward: returns (mu, log_std), each (B, action_dim) float32."""
    B, S = x.shape
    w1 = prepped["w1"]
    Hp = w1.shape[1]
    A = prepped["wh"].shape[1] // 2
    matmul_dtype = w1.dtype

    if matmul_dtype != jnp.float32:
        x = x.astype(matmul_dtype)         # cast once here, not per-tile in-kernel

    # Batch tiling: big tiles amortize the ~0.35 us/step overhead, but keep at
    # least 2 grid steps (when the batch allows) so the "parallel" axis shards
    # across both TensorCores on v7x.
    Bp8 = _round_up(B, 8)
    if block_b is None:
        block_b = max(8, min(1024, _round_up(pl.cdiv(Bp8, 2), 8)))
    block_b = _round_up(block_b, 8)
    Bp = _round_up(B, block_b)
    if Bp != B:
        x = jnp.pad(x, ((0, Bp - B), (0, 0)))
    grid = (Bp // block_b,)

    full = lambda shape: pl.BlockSpec(shape, lambda i: (0,) * len(shape))
    kernel = functools.partial(_actor_kernel, action_dim=A,
                               matmul_dtype=matmul_dtype)

    mu, log_std = pl.pallas_call(
        kernel,
        out_shape=(jax.ShapeDtypeStruct((Bp, A), jnp.float32),
                   jax.ShapeDtypeStruct((Bp, A), jnp.float32)),
        grid=grid,
        in_specs=[
            pl.BlockSpec((block_b, S), lambda i: (i, 0)),   # x (batch-tiled)
            full((S, Hp)),                                  # w1 (norm folded)
            full((1, Hp)),                                  # b1 (norm folded)
            full((Hp, Hp)),                                 # w2
            full((1, Hp)),                                  # b2
            full((Hp, 2 * A)),                              # fused head weight
            full((1, 2 * A)),                               # fused head bias
        ],
        out_specs=(pl.BlockSpec((block_b, A), lambda i: (i, 0)),
                   pl.BlockSpec((block_b, A), lambda i: (i, 0))),
        compiler_params=pltpu.CompilerParams(
            dimension_semantics=("parallel",)),
    )(x, w1, prepped["b1"], prepped["w2"], prepped["b2"],
      prepped["wh"], prepped["bh"])

    if Bp != B:
        mu = mu[:B]
        log_std = log_std[:B]
    return mu, log_std


# ----------------------------------------------------------------------------
# Init + pure-JAX reference
# ----------------------------------------------------------------------------
def xavier_uniform(key, fan_in, fan_out, gain=1.0):
    # Matches torch.nn.init.xavier_uniform_ (gain=1); stored as (in, out).
    bound = gain * math.sqrt(6.0 / (fan_in + fan_out))
    return jax.random.uniform(key, (fan_in, fan_out), jnp.float32, -bound, bound)


def init_actor_params(key, state_dim, action_dim, hidden_dim):
    k1, k2, k3, k4 = jax.random.split(key, 4)
    return {
        "w1": xavier_uniform(k1, state_dim, hidden_dim),
        "b1": jnp.zeros((hidden_dim,), jnp.float32),
        "w2": xavier_uniform(k2, hidden_dim, hidden_dim),
        "b2": jnp.zeros((hidden_dim,), jnp.float32),
        "wmu": xavier_uniform(k3, hidden_dim, action_dim),
        "bmu": jnp.zeros((action_dim,), jnp.float32),
        "wls": xavier_uniform(k4, hidden_dim, action_dim),
        "bls": jnp.zeros((action_dim,), jnp.float32),
    }


def actor_forward_ref(x, xmean, xstd, p):
    xn = (x - xmean) / xstd
    h1 = jnp.maximum(xn @ p["w1"] + p["b1"], 0.0)
    h2 = jnp.maximum(h1 @ p["w2"] + p["b2"], 0.0)
    mu = h2 @ p["wmu"] + p["bmu"]
    ls = jnp.clip(h2 @ p["wls"] + p["bls"], LOG_SIG_MIN, LOG_SIG_MAX)
    return mu, ls


if __name__ == "__main__":
    batch = 128
    state_dim = 16
    action_dim = 4
    hidden_dim = 32

    key = jax.random.PRNGKey(0)
    k_param, k_x, k_mean, k_std = jax.random.split(key, 4)

    params = init_actor_params(k_param, state_dim, action_dim, hidden_dim)
    x = jax.random.normal(k_x, (batch, state_dim), jnp.float32)
    xmean = jax.random.normal(k_mean, (state_dim,), jnp.float32) * 0.1
    xstd = jax.random.uniform(k_std, (state_dim,), jnp.float32, 0.5, 1.5)

    mu_ref, ls_ref = actor_forward_ref(x, xmean, xstd, params)

    # f32 MXU path (use this on v5e; exactness check, works on all generations).
    prepped = prepare_actor_params(params, xmean, xstd)
    mu, log_std = jax.block_until_ready(actor_forward(x, prepped))
    assert mu.shape == (batch, action_dim) and log_std.shape == (batch, action_dim)
    assert jnp.allclose(mu, mu_ref, atol=1e-4, rtol=1e-4)
    assert jnp.allclose(log_std, ls_ref, atol=1e-4, rtol=1e-4)

    # bf16 MXU path (v6e/v7x fast path; f32 accumulation, loose tolerance).
    prepped_bf16 = prepare_actor_params(params, xmean, xstd,
                                        matmul_dtype=jnp.bfloat16)
    mu_bf, ls_bf = jax.block_until_ready(actor_forward(x, prepped_bf16))
    assert jnp.allclose(mu_bf, mu_ref, atol=0.25, rtol=0.05)
    assert jnp.allclose(ls_bf, ls_ref, atol=0.25, rtol=0.05)

    print("KERNEL_OK")
</pallas_src>

<mosaic_0001>
module attributes {stable_mosaic.version = 11 : i64} {
  func.func @_actor_kernel(%arg0: i32, %arg1: memref<64x16xf32, #tpu.memory_space<vmem>>, %arg2: memref<16x128xf32, #tpu.memory_space<vmem>>, %arg3: memref<1x128xf32, #tpu.memory_space<vmem>>, %arg4: memref<128x128xf32, #tpu.memory_space<vmem>>, %arg5: memref<1x128xf32, #tpu.memory_space<vmem>>, %arg6: memref<128x8xf32, #tpu.memory_space<vmem>>, %arg7: memref<1x8xf32, #tpu.memory_space<vmem>>, %arg8: memref<64x4xf32, #tpu.memory_space<vmem>>, %arg9: memref<64x4xf32, #tpu.memory_space<vmem>>) attributes {dimension_semantics = [#tpu.dimension_semantics<parallel>], iteration_bounds = array<i64: 2>, scalar_prefetch = 0 : i64, scratch_operands = 0 : i64, tpu.core_type = #tpu.core_type<tc>, window_params = [{transform_indices = @transform_0, window_bounds = array<i64: 64, 16>}, {pipeline_mode = #tpu.pipeline_mode<synchronous>, transform_indices = @transform_1, window_bounds = array<i64: 16, 128>}, {pipeline_mode = #tpu.pipeline_mode<synchronous>, transform_indices = @transform_2, window_bounds = array<i64: 1, 128>}, {pipeline_mode = #tpu.pipeline_mode<synchronous>, transform_indices = @transform_3, window_bounds = array<i64: 128, 128>}, {pipeline_mode = #tpu.pipeline_mode<synchronous>, transform_indices = @transform_4, window_bounds = array<i64: 1, 128>}, {pipeline_mode = #tpu.pipeline_mode<synchronous>, transform_indices = @transform_5, window_bounds = array<i64: 128, 8>}, {pipeline_mode = #tpu.pipeline_mode<synchronous>, transform_indices = @transform_6, window_bounds = array<i64: 1, 8>}, {transform_indices = @transform_7, window_bounds = array<i64: 64, 4>}, {transform_indices = @transform_8, window_bounds = array<i64: 64, 4>}]} {
    %c0 = arith.constant 0 : index
    %c0_0 = arith.constant 0 : index
    %0 = vector.load %arg1[%c0, %c0_0] : memref<64x16xf32, #tpu.memory_space<vmem>>, vector<64x16xf32>
    %c0_1 = arith.constant 0 : index
    %c0_2 = arith.constant 0 : index
    %1 = vector.load %arg2[%c0_1, %c0_2] : memref<16x128xf32, #tpu.memory_space<vmem>>, vector<16x128xf32>
    %cst = arith.constant dense<0.000000e+00> : vector<64x128xf32>
    %2 = tpu.matmul %0, %1, %cst {dimension_numbers = #tpu.dot_dimension_numbers<[1], [0], [0], [1], [0, 0, 1, 1], [], []>} : vector<64x16xf32>, vector<16x128xf32>, vector<64x128xf32> -> vector<64x128xf32>
    %c0_3 = arith.constant 0 : index
    %c0_4 = arith.constant 0 : index
    %3 = vector.load %arg3[%c0_3, %c0_4] : memref<1x128xf32, #tpu.memory_space<vmem>>, vector<1x128xf32>
    %4 = vector.broadcast %3 : vector<1x128xf32> to vector<64x128xf32>
    %5 = arith.addf %2, %4 : vector<64x128xf32>
    %cst_5 = arith.constant 0.000000e+00 : f32
    %6 = vector.broadcast %cst_5 : f32 to vector<64x128xf32>
    %7 = arith.maximumf %5, %6 : vector<64x128xf32>
    %c0_6 = arith.constant 0 : index
    %c0_7 = arith.constant 0 : index
    %8 = vector.load %arg4[%c0_6, %c0_7] : memref<128x128xf32, #tpu.memory_space<vmem>>, vector<128x128xf32>
    %cst_8 = arith.constant dense<0.000000e+00> : vector<64x128xf32>
    %9 = tpu.matmul %7, %8, %cst_8 {dimension_numbers = #tpu.dot_dimension_numbers<[1], [0], [0], [1], [0, 0, 1, 1], [], []>} : vector<64x128xf32>, vector<128x128xf32>, vector<64x128xf32> -> vector<64x128xf32>
    %c0_9 = arith.constant 0 : index
    %c0_10 = arith.constant 0 : index
    %10 = vector.load %arg5[%c0_9, %c0_10] : memref<1x128xf32, #tpu.memory_space<vmem>>, vector<1x128xf32>
    %11 = vector.broadcast %10 : vector<1x128xf32> to vector<64x128xf32>
    %12 = arith.addf %9, %11 : vector<64x128xf32>
    %cst_11 = arith.constant 0.000000e+00 : f32
    %13 = vector.broadcast %cst_11 : f32 to vector<64x128xf32>
    %14 = arith.maximumf %12, %13 : vector<64x128xf32>
    %c0_12 = arith.constant 0 : index
    %c0_13 = arith.constant 0 : index
    %15 = vector.load %arg6[%c0_12, %c0_13] : memref<128x8xf32, #tpu.memory_space<vmem>>, vector<128x8xf32>
    %cst_14 = arith.constant dense<0.000000e+00> : vector<64x8xf32>
    %16 = tpu.matmul %14, %15, %cst_14 {dimension_numbers = #tpu.dot_dimension_numbers<[1], [0], [0], [1], [0, 0, 1, 1], [], []>} : vector<64x128xf32>, vector<128x8xf32>, vector<64x8xf32> -> vector<64x8xf32>
    %c0_15 = arith.constant 0 : index
    %c0_16 = arith.constant 0 : index
    %17 = vector.load %arg7[%c0_15, %c0_16] : memref<1x8xf32, #tpu.memory_space<vmem>>, vector<1x8xf32>
    %18 = vector.broadcast %17 : vector<1x8xf32> to vector<64x8xf32>
    %19 = arith.addf %16, %18 : vector<64x8xf32>
    %20 = vector.extract_strided_slice %19 {offsets = [0, 0], sizes = [64, 4], strides = [1, 1]} : vector<64x8xf32> to vector<64x4xf32>
    %c0_17 = arith.constant 0 : index
    %c0_18 = arith.constant 0 : index
    %21 = vector.load %arg8[%c0_17, %c0_18] : memref<64x4xf32, #tpu.memory_space<vmem>>, vector<64x4xf32>
    tpu.vector_store %arg8[%c0_17, %c0_18], %20 {strides = array<i32>} : memref<64x4xf32, #tpu.memory_space<vmem>>, vector<64x4xf32>,
    %22 = vector.extract_strided_slice %19 {offsets = [0, 4], sizes = [64, 4], strides = [1, 1]} : vector<64x8xf32> to vector<64x4xf32>
    %cst_19 = arith.constant -2.000000e+01 : f32
    %cst_20 = arith.constant 2.000000e+00 : f32
    %23 = vector.broadcast %cst_19 : f32 to vector<64x4xf32>
    %24 = arith.maximumf %23, %22 : vector<64x4xf32>
    %25 = vector.broadcast %cst_20 : f32 to vector<64x4xf32>
    %26 = arith.minimumf %25, %24 : vector<64x4xf32>
    %c0_21 = arith.constant 0 : index
    %c0_22 = arith.constant 0 : index
    %27 = vector.load %arg9[%c0_21, %c0_22] : memref<64x4xf32, #tpu.memory_space<vmem>>, vector<64x4xf32>
    tpu.vector_store %arg9[%c0_21, %c0_22], %26 {strides = array<i32>} : memref<64x4xf32, #tpu.memory_space<vmem>>, vector<64x4xf32>,
    return
  }
  func.func @transform_0(%arg0: i32) -> (i32, i32) {
    %c0_i32 = arith.constant 0 : i32
    %c0_i32_0 = arith.constant 0 : i32
    return %arg0, %c0_i32 : i32, i32
  }
  func.func @transform_1(%arg0: i32) -> (i32, i32) {
    %c0_i32 = arith.constant 0 : i32
    %c0_i32_0 = arith.constant 0 : i32
    %c0_i32_1 = arith.constant 0 : i32
    return %c0_i32, %c0_i32_0 : i32, i32
  }
  func.func @transform_2(%arg0: i32) -> (i32, i32) {
    %c0_i32 = arith.constant 0 : i32
    %c0_i32_0 = arith.constant 0 : i32
    %c0_i32_1 = arith.constant 0 : i32
    return %c0_i32, %c0_i32_0 : i32, i32
  }
  func.func @transform_3(%arg0: i32) -> (i32, i32) {
    %c0_i32 = arith.constant 0 : i32
    %c0_i32_0 = arith.constant 0 : i32
    %c0_i32_1 = arith.constant 0 : i32
    return %c0_i32, %c0_i32_0 : i32, i32
  }
  func.func @transform_4(%arg0: i32) -> (i32, i32) {
    %c0_i32 = arith.constant 0 : i32
    %c0_i32_0 = arith.constant 0 : i32
    %c0_i32_1 = arith.constant 0 : i32
    return %c0_i32, %c0_i32_0 : i32, i32
  }
  func.func @transform_5(%arg0: i32) -> (i32, i32) {
    %c0_i32 = arith.constant 0 : i32
    %c0_i32_0 = arith.constant 0 : i32
    %c0_i32_1 = arith.constant 0 : i32
    return %c0_i32, %c0_i32_0 : i32, i32
  }
  func.func @transform_6(%arg0: i32) -> (i32, i32) {
    %c0_i32 = arith.constant 0 : i32
    %c0_i32_0 = arith.constant 0 : i32
    %c0_i32_1 = arith.constant 0 : i32
    return %c0_i32, %c0_i32_0 : i32, i32
  }
  func.func @transform_7(%arg0: i32) -> (i32, i32) {
    %c0_i32 = arith.constant 0 : i32
    %c0_i32_0 = arith.constant 0 : i32
    return %arg0, %c0_i32 : i32, i32
  }
  func.func @transform_8(%arg0: i32) -> (i32, i32) {
    %c0_i32 = arith.constant 0 : i32
    %c0_i32_0 = arith.constant 0 : i32
    return %arg0, %c0_i32 : i32, i32
  }
}

</mosaic_0001>

<bundles_post_ra>
// kernel: tpu_custom_call.1
= control target key start
LH: loop header
LB: loop body
LE: loop exit
PB: predicated region body
PF: predicated region fallthrough
CT: control target
= control target key end

     0   :  { %s1214_s27 = smov 0   ;;  %s1392_s0 = inlined_call_operand.vmem [shape: f32[128,16], index: 0, kind: input, shape index: {}]   ;;  %s1393_s1 = inlined_call_operand.vmem [shape: f32[16,128], index: 1, kind: input, shape index: {}]   ;;  %s1394_s2 = inlined_call_operand.vmem [shape: f32[1,128], index: 2, kind: input, shape index: {}]   ;;  %s1395_s3 = inlined_call_operand.vmem [shape: f32[128,128], index: 3, kind: input, shape index: {}]   ;;  %s1396_s4 = inlined_call_operand.vmem [shape: f32[1,128], index: 4, kind: input, shape index: {}]   ;;  %s1397_s5 = inlined_call_operand.vmem [shape: f32[128,8], index: 5, kind: input, shape index: {}]   ;;  %s1398_s6 = inlined_call_operand.vmem [shape: f32[1,8], index: 6, kind: input, shape index: {}]   ;;  %s1399_s7 = inlined_call_operand.vmem [shape: f32[128,4], index: 7, kind: output, shape index: {0}]   ;;  %s1400_s8 = inlined_call_operand.vmem [shape: f32[128,4], index: 8, kind: output, shape index: {1}]  }
   0x1 LB: > { %s897_s28 = sadd.s32 4294967295, %s1166_s27   ;;  %p901_p0 = scmp.ge.s32.totalorder %s1166_s27, 1  ;;  %s1166_s27 = sphi %s1214_s27, %s19_s27  }
   0x2   : > { %p266_p1 = scmp.lt.s32.totalorder %s1166_s27, 3 }
   0x4   : > { %p267_p2 = pnand %p901_p0, %p266_p1 }
   0x5   : > { %v331_v0 = vld [vmem:[%s1393_s1] sm:$0xff] (!%p267_p2)  ;;  %v332_v1 = vld [vmem:[%s1393_s1 + $0x8] sm:$0xff] (!%p267_p2)  ;;  %s902_s11 = sshll.u32 (!%p267_p2), %s897_s28, 3  ;;  %v480_v5 = vld [vmem:[%s1395_s3 + $0x10] sm:$0xff] (!%p267_p2)  ;;  %vm340_vm0 = vcmask (!%p267_p2), 130048   ;;  %vm742_vm1 = vcmask (!%p267_p2), 31744  }
   0x6   : > { %270 = sbr.rel (%p267_p2) target bundleno = 804 (0x324), region = 48  ;;  %v478_v2 = vld [vmem:[%s1395_s3] sm:$0xff] (!%p267_p2)  ;;  %v1083_v3 = vpack.c.bf16 (!%p267_p2), %v332_v1, %v331_v0  ;;  %p306_p3 = scmp.lt.s32.totalorder (!%p267_p2), %s902_s11, 15  ;;  %v479_v4 = vld [vmem:[%s1395_s3 + $0x8] sm:$0xff] (!%p267_p2)  ;;  %v481_v6 = vld [vmem:[%s1395_s3 + $0x18] sm:$0xff] (!%p267_p2) }
   0x7   : > { %v1087_v7 = vpack.c.bf16 (!%p267_p2), %v479_v4, %v478_v2  ;;  %v1091_v8 = vpack.c.bf16 (!%p267_p2), %v481_v6, %v480_v5  ;;  %v482_v9 = vld [vmem:[%s1395_s3 + $0x20] sm:$0xff] (!%p267_p2)  ;;  %v483_v10 = vld [vmem:[%s1395_s3 + $0x28] sm:$0xff] (!%p267_p2)  ;;  %v484_v12 = vld [vmem:[%s1395_s3 + $0x30] sm:$0xff] (!%p267_p2)  ;;  %s1168_s30 = smov (!%p267_p2), 124  }
   0x8   : > { %1084 = vmatprep.subr.bf16.mxu0 (!%p267_p2), %v1083_v3  ;;  %v1095_v11 = vpack.c.bf16 (!%p267_p2), %v483_v10, %v482_v9  ;;  %v485_v13 = vld [vmem:[%s1395_s3 + $0x38] sm:$0xff] (!%p267_p2)  ;;  %v486_v20 = vld [vmem:[%s1395_s3 + $0x40] sm:$0xff] (!%p267_p2)  ;;  %v487_v21 = vld [vmem:[%s1395_s3 + $0x48] sm:$0xff] (!%p267_p2) }
   0x9   : > { %1086 = vmatpush3.bf16.msra.mxu0 (!%p267_p2), %v1083_v3  ;;  %1088 = vmatprep.subr.bf16.mxu1 (!%p267_p2), %v1087_v7  ;;  %v1099_v18 = vpack.c.bf16 (!%p267_p2), %v485_v13, %v484_v12  ;;  %v1103_v23 = vpack.c.bf16 (!%p267_p2), %v487_v21, %v486_v20  ;;  %v488_v25 = vld [vmem:[%s1395_s3 + $0x50] sm:$0xff] (!%p267_p2)  ;;  %v489_v26 = vld [vmem:[%s1395_s3 + $0x58] sm:$0xff] (!%p267_p2)  ;;  %v490_v29 = vld [vmem:[%s1395_s3 + $0x60] sm:$0xff] (!%p267_p2) }
   0xa   : > { %1090 = vmatpush3.bf16.msra.mxu1 (!%p267_p2), %v1087_v7  ;;  %v1107_v28 = vpack.c.bf16 (!%p267_p2), %v489_v26, %v488_v25  ;;  %v491_v30 = vld [vmem:[%s1395_s3 + $0x68] sm:$0xff] (!%p267_p2)  ;;  %v492_v32 = vld [vmem:[%s1395_s3 + $0x70] sm:$0xff] (!%p267_p2)  ;;  %v493_v33 = vld [vmem:[%s1395_s3 + $0x78] sm:$0xff] (!%p267_p2) }
   0xb   : > { %1092 = vmatprep.subr.bf16.mxu1 (!%p267_p2), %v1091_v8  ;;  %v1111_v31 = vpack.c.bf16 (!%p267_p2), %v491_v30, %v490_v29  ;;  %v1115_v34 = vpack.c.bf16 (!%p267_p2), %v493_v33, %v492_v32  ;;  %v614_v35 = vld [vmem:[%s1397_s5] sm:$0xff] (!%p267_p2)  ;;  %v615_v36 = vld [vmem:[%s1397_s5 + $0x8] sm:$0xff] (!%p267_p2)  ;;  %v616_v37 = vld [vmem:[%s1397_s5 + $0x10] sm:$0xff] (!%p267_p2) }
   0xc   : > { %v1119_v38 = vpack.c.bf16 (!%p267_p2), %v615_v36, %v614_v35  ;;  %v617_v39 = vld [vmem:[%s1397_s5 + $0x18] sm:$0xff] (!%p267_p2)  ;;  %v618_v41 = vld [vmem:[%s1397_s5 + $0x20] sm:$0xff] (!%p267_p2)  ;;  %v619_v42 = vld [vmem:[%s1397_s5 + $0x28] sm:$0xff] (!%p267_p2) }
   0xd   : > { %s1402_s11 = smov (!%p306_p3, %s902_s11), 15  ;;  %v1123_v40 = vpack.c.bf16 %v617_v39, %v616_v37  ;;  %v1127_v43 = vpack.c.bf16 %v619_v42, %v618_v41  ;;  %v620_v44 = vld [vmem:[%s1397_s5 + $0x30] sm:$0xff]  ;;  %v621_v45 = vld [vmem:[%s1397_s5 + $0x38] sm:$0xff]  ;;  %v622_v47 = vld [vmem:[%s1397_s5 + $0x40] sm:$0xff] }
   0xe   : > { %s1246_s24 = sshll.u32 %s1402_s11, 3  ;;  %1094 = vmatpush3.bf16.msra.mxu1 %v1091_v8  ;;  %1120 = vmatprep.subr.bf16.mxu0 %v1119_v38  ;;  %v1131_v46 = vpack.c.bf16 %v621_v45, %v620_v44  ;;  %v623_v48 = vld [vmem:[%s1397_s5 + $0x48] sm:$0xff]  ;;  %v624_v50 = vld [vmem:[%s1397_s5 + $0x50] sm:$0xff]  ;;  %v625_v51 = vld [vmem:[%s1397_s5 + $0x58] sm:$0xff] }
   0xf   : > { %s309_s28 = scalar_lea.vmem %s1392_s0, %s1246_s24  ;;  %1096 = vmatprep.subr.bf16.mxu1 %v1095_v11  ;;  %v1135_v49 = vpack.c.bf16 %v623_v48, %v622_v47  ;;  %v1139_v52 = vpack.c.bf16 %v625_v51, %v624_v50  ;;  %v626_v53 = vld [vmem:[%s1397_s5 + $0x60] sm:$0xff]  ;;  %v627_v54 = vld [vmem:[%s1397_s5 + $0x68] sm:$0xff]  ;;  %s1351_s29 = scalar_lea.vmem %s1399_s7, %s1246_s24 }
  0x10   : > { %v323_v14 = vld [vmem:[%s309_s28] sm:$0xff]  ;;  %v324_v15 = vld [vmem:[%s309_s28 + $0x8] sm:$0xff]  ;;  %v325_v16 = vld [vmem:[%s309_s28 + $0x10] sm:$0xff]  ;;  %v1143_v55 = vpack.c.bf16 %v627_v54, %v626_v53  ;;  %s321_s11 = scalar_lea.vmem %s1400_s8, %s1246_s24 }
  0x11   : > { %983 = vmatprep.mubr.msk.f32.mxu0 %vm340_vm0, %v323_v14  ;;  %v326_v17 = vld [vmem:[%s309_s28 + $0x18] sm:$0xff]  ;;  %v327_v19 = vld [vmem:[%s309_s28 + $0x20] sm:$0xff]  ;;  %v328_v22 = vld [vmem:[%s309_s28 + $0x28] sm:$0xff] }
  0x12   : > { %984 = vmatmul.mubr.msk.f32.vlgmr.msra.gmra.mrb[0].mxu0 %vm340_vm0, %v324_v15  ;;  %1098 = vmatpush3.bf16.msra.mxu1 %v1095_v11  ;;  %v329_v24 = vld [vmem:[%s309_s28 + $0x30] sm:$0xff]  ;;  %v330_v27 = vld [vmem:[%s309_s28 + $0x38] sm:$0xff]  ;;  %v908_v56 = vld [vmem:[%s1394_s2] ss:$0 sm:$0xff] }
  0x13   : > { %986 = vmatprep.mubr.msk.f32.mxu0 %vm340_vm0, %v325_v16  ;;  %1100 = vmatprep.subr.bf16.mxu1 %v1099_v18  ;;  %v917_v20 = vld [vmem:[%s1396_s4] ss:$0 sm:$0xff] }
  0x14   : > { %1122 = vmatpush3.bf16.msra.mxu0 %v1119_v38  ;;  %v918_v45 = vld [vmem:[%s1398_s6] ss:$0 sm:$0xff] }
  0x15   : > { %1124 = vmatprep.subr.bf16.mxu0 %v1123_v40 }
  0x16   : > { %987 = vmatmul.mubr.msk.f32.gmra.mrb[2].mxu0 %vm340_vm0, %v326_v17  ;;  %1102 = vmatpush3.bf16.msra.mxu1 %v1099_v18  ;;  %v628_v17 = vld [vmem:[%s1397_s5 + $0x70] sm:$0xff]  ;;  %v629_v18 = vld [vmem:[%s1397_s5 + $0x78] sm:$0xff] }
  0x17   : > { %989 = vmatprep.mubr.msk.f32.mxu0 %vm340_vm0, %v327_v19  ;;  %1104 = vmatprep.subr.bf16.mxu1 %v1103_v23  ;;  %v1147_v19 = vpack.c.bf16 %v629_v18, %v628_v17 }
  0x18   : > { %1126 = vmatpush3.bf16.msra.mxu0 %v1123_v40 }
  0x19   : > { %1128 = vmatprep.subr.bf16.mxu0 %v1127_v43 }
  0x1a   : > { %990 = vmatmul.mubr.msk.f32.gmra.mrb[4].mxu0 %vm340_vm0, %v328_v22  ;;  %1106 = vmatpush3.bf16.msra.mxu1 %v1103_v23 }
  0x1b   : > { %992 = vmatprep.mubr.msk.f32.mxu0 %vm340_vm0, %v329_v24  ;;  %1108 = vmatprep.subr.bf16.mxu1 %v1107_v28 }
  0x1c   : > { %1130 = vmatpush3.bf16.msra.mxu0 %v1127_v43 }
  0x1d   : > { %1132 = vmatprep.subr.bf16.mxu0 %v1131_v46 }
  0x1e   : > { %993 = vmatmul.mubr.msk.f32.gmra.mrb[6].mxu0 %vm340_vm0, %v330_v27  ;;  %1110 = vmatpush3.bf16.msra.mxu1 %v1107_v28 }
  0x1f   : > { %1112 = vmatprep.subr.bf16.mxu1 %v1111_v31 }
  0x20   : > { %1134 = vmatpush3.bf16.msra.mxu0 %v1131_v46 }
  0x21   : > { %1136 = vmatprep.subr.bf16.mxu0 %v1135_v49 }
  0x22   : > { %1114 = vmatpush3.bf16.msra.mxu1 %v1111_v31 }
  0x23   : > { %1116 = vmatprep.subr.bf16.mxu1 %v1115_v34 }
  0x24   : > { %1138 = vmatpush3.bf16.msra.mxu0 %v1135_v49 }
  0x25   : > { %1140 = vmatprep.subr.bf16.mxu0 %v1139_v52 }
  0x26   : > { %1118 = vmatpush3.bf16.msra.mxu1 %v1115_v34 }
  0x28   : > { %1142 = vmatpush3.bf16.msra.mxu0 %v1139_v52 }
  0x29   : > { %1144 = vmatprep.subr.bf16.mxu0 %v1143_v55 }
  0x2c   : > { %1146 = vmatpush3.bf16.msra.mxu0 %v1143_v55 }
  0x2d   : > { %1148 = vmatprep.subr.bf16.mxu0 %v1147_v19 }
  0x30   : > { %1150 = vmatpush3.bf16.msra.mxu0 %v1147_v19 }
  0xe5   : > { %v985_v57 = vpop.f32.mrb[0].mxu0 }
  0xe6   : > { %v437_v58 = vadd.f32 %v985_v57, %v908_v56  ;;  %v431_v59 = vpop.f32.mrb[1].mxu0 }
  0xe7   : > { %v432_v60 = vadd.f32 %v908_v56, %v431_v59 }
  0xe8   : > { %v471_v63 = vmax.f32 %v437_v58, 0.0 }
  0xe9   : > { %v988_v61 = vpop.f32.mrb[2].mxu0  ;;  %v470_v62 = vmax.f32 %v432_v60, 0.0 }
  0xea   : > { %v447_v0 = vadd.f32 %v988_v61, %v908_v56  ;;  %v441_v1 = vpop.f32.mrb[3].mxu0 }
  0xeb   : > { %v442_v2 = vadd.f32 %v908_v56, %v441_v1  ;;  %1027 = vmatprep.mubr.f32.mxu1 %v470_v62 }
  0xec   : > { %1028 = vmatmul.mubr.f32.vlgmr.msra.gmra.mrb[0].mxu1 %v471_v63  ;;  %v473_v5 = vmax.f32 %v447_v0, 0.0 }
  0xed   : > { %v472_v3 = vmax.f32 %v442_v2, 0.0  ;;  %v991_v4 = vpop.f32.mrb[4].mxu0 }
  0xee   : > { %v457_v6 = vadd.f32 %v991_v4, %v908_v56  ;;  %v451_v7 = vpop.f32.mrb[5].mxu0 }
  0xef   : > { %v452_v8 = vadd.f32 %v908_v56, %v451_v7  ;;  %1030 = vmatprep.mubr.f32.mxu1 %v472_v3 }
  0xf0   : > { %v475_v9 = vmax.f32 %v457_v6, 0.0  ;;  %1031 = vmatmul.mubr.f32.gmra.mrb[2].mxu1 %v473_v5 }
  0xf1   : > { %v474_v10 = vmax.f32 %v452_v8, 0.0  ;;  %v994_v11 = vpop.f32.mrb[6].mxu0 }
  0xf2   : > { %v467_v12 = vadd.f32 %v994_v11, %v908_v56  ;;  %v461_v13 = vpop.f32.mrb[7].mxu0 }
  0xf3   : > { %v462_v14 = vadd.f32 %v908_v56, %v461_v13  ;;  %1033 = vmatprep.mubr.f32.mxu1 %v474_v10 }
  0xf4   : > { %v477_v15 = vmax.f32 %v467_v12, 0.0  ;;  %1034 = vmatmul.mubr.f32.gmra.mrb[4].mxu1 %v475_v9 }
  0xf5   : > { %v476_v16 = vmax.f32 %v462_v14, 0.0 }
  0xf7   : > { %1036 = vmatprep.mubr.f32.mxu1 %v476_v16 }
  0xf8   : > { %1037 = vmatmul.mubr.f32.gmra.mrb[6].mxu1 %v477_v15 }
 0x1bf   : > { %v1029_v21 = vpop.f32.mrb[0].mxu1 }
 0x1c0   : > { %v573_v22 = vadd.f32 %v1029_v21, %v917_v20  ;;  %v567_v23 = vpop.f32.mrb[1].mxu1 }
 0x1c1   : > { %v568_v24 = vadd.f32 %v917_v20, %v567_v23 }
 0x1c2   : > { %v607_v27 = vmax.f32 %v573_v22, 0.0 }
 0x1c3   : > { %v606_v25 = vmax.f32 %v568_v24, 0.0  ;;  %v1032_v26 = vpop.f32.mrb[2].mxu1 }
 0x1c4   : > { %v583_v28 = vadd.f32 %v1032_v26, %v917_v20  ;;  %v577_v29 = vpop.f32.mrb[3].mxu1 }
 0x1c5   : > { %v578_v30 = vadd.f32 %v917_v20, %v577_v29  ;;  %1071 = vmatprep.mubr.f32.mxu0 %v606_v25 }
 0x1c6   : > { %1072 = vmatmul.mubr.f32.vlgmr.msra.gmra.mrb[8].mxu0 %v607_v27  ;;  %v609_v33 = vmax.f32 %v583_v28, 0.0 }
 0x1c7   : > { %v608_v31 = vmax.f32 %v578_v30, 0.0  ;;  %v1035_v32 = vpop.f32.mrb[4].mxu1 }
 0x1c8   : > { %v593_v34 = vadd.f32 %v1035_v32, %v917_v20  ;;  %v587_v35 = vpop.f32.mrb[5].mxu1 }
 0x1c9   : > { %v588_v36 = vadd.f32 %v917_v20, %v587_v35  ;;  %1074 = vmatprep.mubr.f32.mxu0 %v608_v31 }
 0x1ca   : > { %v611_v37 = vmax.f32 %v593_v34, 0.0  ;;  %1075 = vmatmul.mubr.f32.gmra.mrb[10].mxu0 %v609_v33 }
 0x1cb   : > { %v610_v38 = vmax.f32 %v588_v36, 0.0  ;;  %v1038_v39 = vpop.f32.mrb[6].mxu1 }
 0x1cc   : > { %v603_v40 = vadd.f32 %v1038_v39, %v917_v20  ;;  %v597_v41 = vpop.f32.mrb[7].mxu1 }
 0x1cd   : > { %v598_v42 = vadd.f32 %v917_v20, %v597_v41  ;;  %1077 = vmatprep.mubr.f32.mxu0 %v610_v38 }
 0x1ce   : > { %v613_v43 = vmax.f32 %v603_v40, 0.0  ;;  %1078 = vmatmul.mubr.f32.gmra.mrb[12].mxu0 %v611_v37 }
 0x1cf   : > { %v612_v44 = vmax.f32 %v598_v42, 0.0 }
 0x1d1   : > { %1080 = vmatprep.mubr.f32.mxu0 %v612_v44 }
 0x1d2   : > { %1081 = vmatmul.mubr.f32.gmra.mrb[14].mxu0 %v613_v43 }
 0x299   : > { %v1073_v46 = vpop.f32.mrb[8].mxu0 }
 0x29a   : > { %v709_v47 = vadd.f32 %v1073_v46, %v918_v45  ;;  %v703_v48 = vpop.f32.mrb[9].mxu0 }
 0x29b   : > { %v704_v49 = vadd.f32 %v918_v45, %v703_v48 }
 0x29c   : > { %744 = vst.msk [vmem:[%s1351_s29 + $0x8] sm:$0xff] %vm742_vm1, %v709_v47  ;;  %v752_v50 = vmax.f32 %v709_v47, -20.0 }
 0x29d   : > { %743 = vst.msk [vmem:[%s1351_s29] sm:$0xff] %vm742_vm1, %v704_v49  ;;  %v1076_v51 = vpop.f32.mrb[10].mxu0  ;;  %v751_v52 = vmax.f32 %v704_v49, -20.0 }
 0x29e   : > { %v719_v53 = vadd.f32 %v1076_v51, %v918_v45  ;;  %v713_v54 = vpop.f32.mrb[11].mxu0  ;;  %v760_v55 = vmin.f32 %v752_v50, 2.0 }
 0x29f   : > { %v714_v56 = vadd.f32 %v918_v45, %v713_v54  ;;  %v759_v59 = vmin.f32 %v751_v52, 2.0 }
 0x2a0   : > { %746 = vst.msk [vmem:[%s1351_s29 + $0x18] sm:$0xff] %vm742_vm1, %v719_v53  ;;  %777 = vrot.lane.b32.xlu0 %v760_v55, %s1168_s30  ;;  %v754_v57 = vmax.f32 %v719_v53, -20.0 }
 0x2a1   : > { %745 = vst.msk [vmem:[%s1351_s29 + $0x10] sm:$0xff] %vm742_vm1, %v714_v56  ;;  %v1079_v58 = vpop.f32.mrb[12].mxu0  ;;  %v753_v60 = vmax.f32 %v714_v56, -20.0 }
 0x2a2   : > { %v729_v61 = vadd.f32 %v1079_v58, %v918_v45  ;;  %v723_v62 = vpop.f32.mrb[13].mxu0  ;;  %v762_v63 = vmin.f32 %v754_v57, 2.0 }
 0x2a3   : > { %v724_v0 = vadd.f32 %v918_v45, %v723_v62  ;;  %v761_v3 = vmin.f32 %v753_v60, 2.0 }
 0x2a4   : > { %748 = vst.msk [vmem:[%s1351_s29 + $0x28] sm:$0xff] %vm742_vm1, %v729_v61  ;;  %781 = vrot.lane.b32.xlu1 %v762_v63, %s1168_s30  ;;  %775 = vrot.lane.b32.xlu0 %v759_v59, %s1168_s30  ;;  %v756_v4 = vmax.f32 %v729_v61, -20.0 }
 0x2a5   : > { %747 = vst.msk [vmem:[%s1351_s29 + $0x20] sm:$0xff] %vm742_vm1, %v724_v0  ;;  %v755_v1 = vmax.f32 %v724_v0, -20.0  ;;  %v1082_v2 = vpop.f32.mrb[14].mxu0 }
 0x2a6   : > { %v739_v5 = vadd.f32 %v1082_v2, %v918_v45  ;;  %v733_v6 = vpop.f32.mrb[15].mxu0  ;;  %v764_v10 = vmin.f32 %v756_v4, 2.0 }
 0x2a7   : > { %v763_v7 = vmin.f32 %v755_v1, 2.0  ;;  %v734_v8 = vadd.f32 %v918_v45, %v733_v6 }
 0x2a8   : > { %750 = vst.msk [vmem:[%s1351_s29 + $0x38] sm:$0xff] %vm742_vm1, %v739_v5  ;;  %779 = vrot.lane.b32.xlu1 %v761_v3, %s1168_s30  ;;  %v758_v11 = vmax.f32 %v739_v5, -20.0 }
 0x2a9   : > { %749 = vst.msk [vmem:[%s1351_s29 + $0x30] sm:$0xff] %vm742_vm1, %v734_v8  ;;  %v757_v9 = vmax.f32 %v734_v8, -20.0  ;;  %783 = vrot.lane.b32.xlu0 %v763_v7, %s1168_s30 }
 0x2aa   : > { %v766_v13 = vmin.f32 %v758_v11, 2.0 }
 0x2ab   : > { %v765_v12 = vmin.f32 %v757_v9, 2.0 }
 0x2ac   : > { %785 = vrot.lane.b32.xlu1 %v764_v10, %s1168_s30 }
 0x2ad   : > { %787 = vrot.lane.b32.xlu0 %v765_v12, %s1168_s30 }
 0x2b0   : > { %789 = vrot.lane.b32.xlu1 %v766_v13, %s1168_s30 }
 0x312   : > { %v778_v14 = vpop.permute.xlu0 %777 }
 0x313   : > { %800 = vst.msk [vmem:[%s321_s11 + $0x8] sm:$0xff] %vm742_vm1, %v778_v14 }
 0x316   : > { %v782_v15 = vpop.permute.xlu1 %781  ;;  %v776_v16 = vpop.permute.xlu0 %775 }
 0x317   : > { %802 = vst.msk [vmem:[%s321_s11 + $0x18] sm:$0xff] %vm742_vm1, %v782_v15  ;;  %799 = vst.msk [vmem:[%s321_s11] sm:$0xff] %vm742_vm1, %v776_v16 }
 0x31a   : > { %v780_v17 = vpop.permute.xlu1 %779 }
 0x31b   : > { %801 = vst.msk [vmem:[%s321_s11 + $0x10] sm:$0xff] %vm742_vm1, %v780_v17  ;;  %v784_v18 = vpop.permute.xlu0 %783 }
 0x31c   : > { %803 = vst.msk [vmem:[%s321_s11 + $0x20] sm:$0xff] %vm742_vm1, %v784_v18 }
 0x31e   : > { %v786_v19 = vpop.permute.xlu1 %785 }
 0x31f   : > { %804 = vst.msk [vmem:[%s321_s11 + $0x28] sm:$0xff] %vm742_vm1, %v786_v19  ;;  %v788_v20 = vpop.permute.xlu0 %787 }
 0x320   : > { %805 = vst.msk [vmem:[%s321_s11 + $0x30] sm:$0xff] %vm742_vm1, %v788_v20 }
 0x322   : > { %v790_v21 = vpop.permute.xlu1 %789 }
 0x323   : > { %806 = vst.msk [vmem:[%s321_s11 + $0x38] sm:$0xff] %vm742_vm1, %v790_v21 }
 0x324 PF: > { %s19_s27 = sadd.s32 1, %s1166_s27  }
 0x325   : > { %p16_p4 = scmp.ge.s32.totalorder %s19_s27, 4  }
 0x327   :  { %18 = sbr.rel (!%p16_p4) target bundleno = 1 (0x1), region = 90 }

</bundles_post_ra>
